<compile_context>
chip_gen: v5e
topology: v5e:2x2
jax: 0.10.0
libtpu: 0.0.40
codegen_flags: <defaults>
</compile_context>

<pallas_src>
import functools

import jax
import jax.numpy as jnp
from jax.experimental import pallas as pl
from jax.experimental.pallas import tpu as pltpu

INPUT_DIM = 8      # fetch_california_housing has 8 features
OUTPUT_DIM = 1
HIDDEN = (64, 32, 32, 16)
PAD = 128          # all hidden widths padded to one full lane width (zero MXU/VPU cost)


def _round_up(n, m):
    return ((n + m - 1) // m) * m


def _mlp_kernel(x_ref, wpk_ref, bpk_ref, o_ref):
    x = x_ref[...]                               # (bm, 8)

    w1 = wpk_ref[0][:INPUT_DIM, :]               # (8, 128)   cols >= 64 are zero
    w2 = wpk_ref[1]                              # (128, 128) real block is [:64, :32]
    w3 = wpk_ref[2]                              # (128, 128) real block is [:32, :32]
    w45 = wpk_ref[3][:8, :]                      # (8, 128)   only row 0 is real (folded l4@l5)

    b = bpk_ref[...]                             # (4, 128)
    b1 = b[0:1, :]
    b2 = b[1:2, :]
    b3 = b[2:3, :]
    b45 = b[3:4, 0:1]                            # (1, 1)

    h = jnp.maximum(jnp.dot(x, w1, preferred_element_type=jnp.float32) + b1, 0.0)
    # nn.Dropout(0.2) is the identity in eval mode.
    # TODO(synk): training-mode dropout not implemented.
    h = jnp.maximum(jnp.dot(h, w2, preferred_element_type=jnp.float32) + b2, 0.0)
    h = jnp.maximum(jnp.dot(h, w3, preferred_element_type=jnp.float32) + b3, 0.0)

    # linear4 + linear5 folded into (w45, b45); computed transposed so the result
    # is a lane-dense (1, bm) row rather than a (bm, 1) column of masked stores.
    y = jnp.dot(w45, h.T, preferred_element_type=jnp.float32)   # (8, bm); rows 1..7 are 0
    o_ref[...] = (y[0:1, :] + b45).astype(o_ref.dtype)


def _pack_params(params):
    """Fold linear4@linear5 and pack all weights/biases into 2 padded arrays."""
    w1, b1, w2, b2, w3, b3, w4, b4, w5, b5 = params
    w45 = w4 @ w5                    # (32, 1)
    b45 = b4 @ w5 + b5               # (1, 1)

    wpk = jnp.zeros((4, PAD, PAD), jnp.float32)
    wpk = wpk.at[0, : w1.shape[0], : w1.shape[1]].set(w1)
    wpk = wpk.at[1, : w2.shape[0], : w2.shape[1]].set(w2)
    wpk = wpk.at[2, : w3.shape[0], : w3.shape[1]].set(w3)
    wpk = wpk.at[3, 0, : w45.shape[0]].set(w45[:, 0])

    bpk = jnp.zeros((4, PAD), jnp.float32)
    bpk = bpk.at[0, : b1.shape[1]].set(b1[0])
    bpk = bpk.at[1, : b2.shape[1]].set(b2[0])
    bpk = bpk.at[2, : b3.shape[1]].set(b3[0])
    bpk = bpk.at[3, 0].set(b45[0, 0])
    return wpk, bpk


@functools.partial(jax.jit, static_argnames=("block_m",))
def mlp_forward(x, params, *, block_m=None):
    """x: (B, INPUT_DIM) float32. params: flat tuple (w1,b1,...,w5,b5),
    weights stored as (in_features, out_features), biases as (1, out_features)."""
    B, D = x.shape
    assert D == INPUT_DIM

    wpk, bpk = _pack_params(params)

    if block_m is None:
        # Large tiles amortize the ~0.35us/grid-step overhead; keep >= 2 grid
        # steps when the batch allows so both v7x TensorCores get work.
        block_m = min(2048, _round_up(pl.cdiv(B, 2), 128))
    block_m = max(128, _round_up(block_m, 128))

    num_blocks = pl.cdiv(B, block_m)
    B_pad = num_blocks * block_m
    if B_pad != B:
        x = jnp.pad(x, ((0, B_pad - B), (0, 0)))

    out = pl.pallas_call(
        _mlp_kernel,
        out_shape=jax.ShapeDtypeStruct((1, B_pad), x.dtype),
        grid_spec=pltpu.PrefetchScalarGridSpec(
            num_scalar_prefetch=0,
            grid=(num_blocks,),
            in_specs=[
                pl.BlockSpec((block_m, INPUT_DIM), lambda i: (i, 0)),
                pl.BlockSpec((4, PAD, PAD), lambda i: (0, 0, 0)),
                pl.BlockSpec((4, PAD), lambda i: (0, 0)),
            ],
            out_specs=pl.BlockSpec((1, block_m), lambda i: (0, i)),
        ),
        compiler_params=pltpu.CompilerParams(
            dimension_semantics=("parallel",),
        ),
    )(x, wpk, bpk)

    return out[0, :B][:, None]


def init_params(key):
    """Deterministic init mimicking PyTorch's default Linear init:
    U(-1/sqrt(fan_in), 1/sqrt(fan_in)); weights stored as (in_features, out_features)."""
    dims = (INPUT_DIM,) + HIDDEN + (OUTPUT_DIM,)
    params = []
    for i in range(len(dims) - 1):
        fan_in, fan_out = dims[i], dims[i + 1]
        key, kw, kb = jax.random.split(key, 3)
        bound = 1.0 / jnp.sqrt(jnp.float32(fan_in))
        w = jax.random.uniform(kw, (fan_in, fan_out), jnp.float32, -bound, bound)
        b = jax.random.uniform(kb, (1, fan_out), jnp.float32, -bound, bound)
        params.extend([w, b])
    return tuple(params)


def reference_forward(x, params):
    w1, b1, w2, b2, w3, b3, w4, b4, w5, b5 = params
    h = jnp.maximum(x @ w1 + b1, 0.0)
    h = jnp.maximum(h @ w2 + b2, 0.0)
    h = jnp.maximum(h @ w3 + b3, 0.0)
    h = h @ w4 + b4
    return h @ w5 + b5


if __name__ == "__main__":
    key = jax.random.PRNGKey(0)
    k_params, k_x = jax.random.split(key)

    params = init_params(k_params)

    B = 200  # small synthetic batch; not a multiple of the tile size (exercises padding)
    x = jax.random.normal(k_x, (B, INPUT_DIM), dtype=jnp.float32)

    out = jax.block_until_ready(mlp_forward(x, params))

    ref = reference_forward(x, params)
    assert out.shape == (B, OUTPUT_DIM)
    assert jnp.allclose(out, ref, atol=1e-4, rtol=1e-4), "mismatch vs reference"

    print("KERNEL_OK")
</pallas_src>

<mosaic_0001>
module attributes {stable_mosaic.version = 11 : i64} {
  func.func @_mlp_kernel(%arg0: i32, %arg1: memref<128x8xf32, #tpu.memory_space<vmem>>, %arg2: memref<4x128x128xf32, #tpu.memory_space<vmem>>, %arg3: memref<4x128xf32, #tpu.memory_space<vmem>>, %arg4: memref<1x128xf32, #tpu.memory_space<vmem>>) attributes {dimension_semantics = [#tpu.dimension_semantics<parallel>], iteration_bounds = array<i64: 2>, scalar_prefetch = 0 : i64, scratch_operands = 0 : i64, tpu.core_type = #tpu.core_type<tc>, window_params = [{transform_indices = @transform_0, window_bounds = array<i64: 128, 8>}, {pipeline_mode = #tpu.pipeline_mode<synchronous>, transform_indices = @transform_1, window_bounds = array<i64: 4, 128, 128>}, {pipeline_mode = #tpu.pipeline_mode<synchronous>, transform_indices = @transform_2, window_bounds = array<i64: 4, 128>}, {transform_indices = @transform_3, window_bounds = array<i64: 1, 128>}]} {
    %c0 = arith.constant 0 : index
    %c0_0 = arith.constant 0 : index
    %0 = vector.load %arg1[%c0, %c0_0] : memref<128x8xf32, #tpu.memory_space<vmem>>, vector<128x8xf32>
    %c0_1 = arith.constant 0 : index
    %c0_2 = arith.constant 0 : index
    %c0_3 = arith.constant 0 : index
    %1 = vector.load %arg2[%c0_1, %c0_2, %c0_3] : memref<4x128x128xf32, #tpu.memory_space<vmem>>, vector<1x128x128xf32>
    %2 = vector.shape_cast %1 : vector<1x128x128xf32> to vector<128x128xf32>
    %3 = vector.extract_strided_slice %2 {offsets = [0, 0], sizes = [8, 128], strides = [1, 1]} : vector<128x128xf32> to vector<8x128xf32>
    %c1 = arith.constant 1 : index
    %c0_4 = arith.constant 0 : index
    %c0_5 = arith.constant 0 : index
    %4 = vector.load %arg2[%c1, %c0_4, %c0_5] : memref<4x128x128xf32, #tpu.memory_space<vmem>>, vector<1x128x128xf32>
    %5 = vector.shape_cast %4 : vector<1x128x128xf32> to vector<128x128xf32>
    %c2 = arith.constant 2 : index
    %c0_6 = arith.constant 0 : index
    %c0_7 = arith.constant 0 : index
    %6 = vector.load %arg2[%c2, %c0_6, %c0_7] : memref<4x128x128xf32, #tpu.memory_space<vmem>>, vector<1x128x128xf32>
    %7 = vector.shape_cast %6 : vector<1x128x128xf32> to vector<128x128xf32>
    %c3 = arith.constant 3 : index
    %c0_8 = arith.constant 0 : index
    %c0_9 = arith.constant 0 : index
    %8 = vector.load %arg2[%c3, %c0_8, %c0_9] : memref<4x128x128xf32, #tpu.memory_space<vmem>>, vector<1x128x128xf32>
    %9 = vector.shape_cast %8 : vector<1x128x128xf32> to vector<128x128xf32>
    %10 = vector.extract_strided_slice %9 {offsets = [0, 0], sizes = [8, 128], strides = [1, 1]} : vector<128x128xf32> to vector<8x128xf32>
    %c0_10 = arith.constant 0 : index
    %c0_11 = arith.constant 0 : index
    %11 = vector.load %arg3[%c0_10, %c0_11] : memref<4x128xf32, #tpu.memory_space<vmem>>, vector<4x128xf32>
    %12 = vector.extract_strided_slice %11 {offsets = [0, 0], sizes = [1, 128], strides = [1, 1]} : vector<4x128xf32> to vector<1x128xf32>
    %13 = vector.extract_strided_slice %11 {offsets = [1, 0], sizes = [1, 128], strides = [1, 1]} : vector<4x128xf32> to vector<1x128xf32>
    %14 = vector.extract_strided_slice %11 {offsets = [2, 0], sizes = [1, 128], strides = [1, 1]} : vector<4x128xf32> to vector<1x128xf32>
    %15 = vector.extract_strided_slice %11 {offsets = [3, 0], sizes = [1, 1], strides = [1, 1]} : vector<4x128xf32> to vector<1x1xf32>
    %cst = arith.constant dense<0.000000e+00> : vector<128x128xf32>
    %16 = tpu.matmul %0, %3, %cst {dimension_numbers = #tpu.dot_dimension_numbers<[1], [0], [0], [1], [0, 0, 1, 1], [], []>} : vector<128x8xf32>, vector<8x128xf32>, vector<128x128xf32> -> vector<128x128xf32>
    %17 = vector.broadcast %12 : vector<1x128xf32> to vector<128x128xf32>
    %18 = arith.addf %16, %17 : vector<128x128xf32>
    %cst_12 = arith.constant 0.000000e+00 : f32
    %19 = vector.broadcast %cst_12 : f32 to vector<128x128xf32>
    %20 = arith.maximumf %18, %19 : vector<128x128xf32>
    %cst_13 = arith.constant dense<0.000000e+00> : vector<128x128xf32>
    %21 = tpu.matmul %20, %5, %cst_13 {dimension_numbers = #tpu.dot_dimension_numbers<[1], [0], [0], [1], [0, 0, 1, 1], [], []>} : vector<128x128xf32>, vector<128x128xf32>, vector<128x128xf32> -> vector<128x128xf32>
    %22 = vector.broadcast %13 : vector<1x128xf32> to vector<128x128xf32>
    %23 = arith.addf %21, %22 : vector<128x128xf32>
    %cst_14 = arith.constant 0.000000e+00 : f32
    %24 = vector.broadcast %cst_14 : f32 to vector<128x128xf32>
    %25 = arith.maximumf %23, %24 : vector<128x128xf32>
    %cst_15 = arith.constant dense<0.000000e+00> : vector<128x128xf32>
    %26 = tpu.matmul %25, %7, %cst_15 {dimension_numbers = #tpu.dot_dimension_numbers<[1], [0], [0], [1], [0, 0, 1, 1], [], []>} : vector<128x128xf32>, vector<128x128xf32>, vector<128x128xf32> -> vector<128x128xf32>
    %27 = vector.broadcast %14 : vector<1x128xf32> to vector<128x128xf32>
    %28 = arith.addf %26, %27 : vector<128x128xf32>
    %cst_16 = arith.constant 0.000000e+00 : f32
    %29 = vector.broadcast %cst_16 : f32 to vector<128x128xf32>
    %30 = arith.maximumf %28, %29 : vector<128x128xf32>
    %31 = tpu.transpose %30, [1, 0] : vector<128x128xf32> -> vector<128x128xf32>
    %cst_17 = arith.constant dense<0.000000e+00> : vector<8x128xf32>
    %32 = tpu.matmul %10, %31, %cst_17 {dimension_numbers = #tpu.dot_dimension_numbers<[1], [0], [0], [1], [0, 0, 1, 1], [], []>} : vector<8x128xf32>, vector<128x128xf32>, vector<8x128xf32> -> vector<8x128xf32>
    %33 = vector.extract_strided_slice %32 {offsets = [0, 0], sizes = [1, 128], strides = [1, 1]} : vector<8x128xf32> to vector<1x128xf32>
    %34 = vector.broadcast %15 : vector<1x1xf32> to vector<1x128xf32>
    %35 = arith.addf %33, %34 : vector<1x128xf32>
    %c0_18 = arith.constant 0 : index
    %c0_19 = arith.constant 0 : index
    %36 = vector.load %arg4[%c0_18, %c0_19] : memref<1x128xf32, #tpu.memory_space<vmem>>, vector<1x128xf32>
    tpu.vector_store %arg4[%c0_18, %c0_19], %35 {strides = array<i32>} : memref<1x128xf32, #tpu.memory_space<vmem>>, vector<1x128xf32>,
    return
  }
  func.func @transform_0(%arg0: i32) -> (i32, i32) {
    %c0_i32 = arith.constant 0 : i32
    %c0_i32_0 = arith.constant 0 : i32
    return %arg0, %c0_i32 : i32, i32
  }
  func.func @transform_1(%arg0: i32) -> (i32, i32, i32) {
    %c0_i32 = arith.constant 0 : i32
    %c0_i32_0 = arith.constant 0 : i32
    %c0_i32_1 = arith.constant 0 : i32
    %c0_i32_2 = arith.constant 0 : i32
    return %c0_i32, %c0_i32_0, %c0_i32_1 : i32, i32, i32
  }
  func.func @transform_2(%arg0: i32) -> (i32, i32) {
    %c0_i32 = arith.constant 0 : i32
    %c0_i32_0 = arith.constant 0 : i32
    %c0_i32_1 = arith.constant 0 : i32
    return %c0_i32, %c0_i32_0 : i32, i32
  }
  func.func @transform_3(%arg0: i32) -> (i32, i32) {
    %c0_i32 = arith.constant 0 : i32
    %c0_i32_0 = arith.constant 0 : i32
    return %c0_i32, %arg0 : i32, i32
  }
}

</mosaic_0001>

<bundles_post_ra>
// kernel: mlp_forward.1
= control target key start
LH: loop header
LB: loop body
LE: loop exit
PB: predicated region body
PF: predicated region fallthrough
CT: control target
= control target key end

     0   :  { %s690_s12 = smov 0   ;;  %s878_s0 = inlined_call_operand.vmem [shape: f32[256,8], index: 0, kind: input, shape index: {}]   ;;  %s879_s1 = inlined_call_operand.vmem [shape: f32[4,128,128], index: 1, kind: input, shape index: {}]   ;;  %s880_s2 = inlined_call_operand.vmem [shape: f32[4,128], index: 2, kind: input, shape index: {}]   ;;  %s881_s3 = inlined_call_operand.vmem [shape: f32[1,256], index: 3, kind: output, shape index: {}]  }
   0x1 LB: > { %s696_s13 = sadd.s32 4294967295, %s667_s12   ;;  %p597_p0 = scmp.ge.s32.totalorder %s667_s12, 1  ;;  %s667_s12 = sphi %s690_s12, %s13_s12  }
   0x2   : > { %p138_p1 = scmp.lt.s32.totalorder %s667_s12, 3 }
   0x4   : > { %p139_p2 = pnand %p597_p0, %p138_p1 }
   0x5   : > { %s598_s16 = sshll.u32 (!%p139_p2), %s696_s13, 4  ;;  %p166_p4 = scmp.lt.s32.totalorder (!%p139_p2), %s696_s13, 1 }
   0x6   : > { %142 = sbr.rel (%p139_p2) target bundleno = 729 (0x2d9), region = 32  ;;  %p161_p3 = scmp.lt.s32.totalorder (!%p139_p2), %s598_s16, 31 }
   0xb   : > { %v185_v0 = vld [vmem:[%s879_s1] sm:$0xff]  ;;  %s883_s16 = smov (!%p161_p3, %s598_s16), 31  ;;  %vm224_vm0 = vcmask 64512   ;;  %v615_v10 = vld [vmem:[%s879_s1 + $0xf8] sm:$0xff]  ;;  %v614_v11 = vld [vmem:[%s879_s1 + $0xf0] sm:$0xff]  ;;  %s885_s13 = smov (!%p166_p4, %s696_s13), 1 }
   0xc   : > { %288 = vmatpush.msra.mxu0 %v185_v0  ;;  %s599_s17 = sshll.u32 %s883_s16, 3  ;;  %355 = vmatpush.msra.mxu1 %v615_v10  ;;  %v613_v12 = vld [vmem:[%s879_s1 + $0xe8] sm:$0xff]  ;;  %v612_v14 = vld [vmem:[%s879_s1 + $0xe0] sm:$0xff]  ;;  %v611_v15 = vld [vmem:[%s879_s1 + $0xd8] sm:$0xff]  ;;  %s168_s16 = scalar_lea.vmem %s881_s3, %s885_s13 }
   0xd   : > { %s707_s20 = scalar_lea.vmem %s878_s0, %s599_s17  ;;  %v610_v16 = vld [vmem:[%s879_s1 + $0xd0] sm:$0xff]  ;;  %v609_v17 = vld [vmem:[%s879_s1 + $0xc8] sm:$0xff]  ;;  %v608_v19 = vld [vmem:[%s879_s1 + $0xc0] sm:$0xff] }
   0xe   : > { %v169_v1 = vld [vmem:[%s707_s20] sm:$0xff]  ;;  %v170_v2 = vld [vmem:[%s707_s20 + $0x8] sm:$0xff]  ;;  %v171_v3 = vld [vmem:[%s707_s20 + $0x10] sm:$0xff]  ;;  %356 = vmatpush.msra.mxu1 %v614_v11 }
   0xf   : > { %633 = vmatmul.msk.f32.vlgmr.msra.gmra.mxu0 %vm224_vm0, %v169_v1  ;;  %v172_v4 = vld [vmem:[%s707_s20 + $0x18] sm:$0xff]  ;;  %v173_v5 = vld [vmem:[%s707_s20 + $0x20] sm:$0xff]  ;;  %v174_v6 = vld [vmem:[%s707_s20 + $0x28] sm:$0xff] }
  0x10   : > { %v175_v7 = vld [vmem:[%s707_s20 + $0x30] sm:$0xff]  ;;  %v176_v8 = vld [vmem:[%s707_s20 + $0x38] sm:$0xff]  ;;  %v177_v9 = vld [vmem:[%s707_s20 + $0x40] sm:$0xff]  ;;  %357 = vmatpush.msra.mxu1 %v613_v12 }
  0x11   : > { %v178_v13 = vld [vmem:[%s707_s20 + $0x48] sm:$0xff]  ;;  %v179_v18 = vld [vmem:[%s707_s20 + $0x50] sm:$0xff]  ;;  %v607_v20 = vld [vmem:[%s879_s1 + $0xb8] sm:$0xff] }
  0x12   : > { %358 = vmatpush.msra.mxu1 %v612_v14  ;;  %v606_v21 = vld [vmem:[%s879_s1 + $0xb0] sm:$0xff]  ;;  %v605_v22 = vld [vmem:[%s879_s1 + $0xa8] sm:$0xff]  ;;  %v180_v23 = vld [vmem:[%s707_s20 + $0x58] sm:$0xff] }
  0x13   : > { %v604_v24 = vld [vmem:[%s879_s1 + $0xa0] sm:$0xff]  ;;  %v603_v25 = vld [vmem:[%s879_s1 + $0x98] sm:$0xff]  ;;  %v602_v26 = vld [vmem:[%s879_s1 + $0x90] sm:$0xff] }
  0x14   : > { %359 = vmatpush.msra.mxu1 %v611_v15  ;;  %v181_v27 = vld [vmem:[%s707_s20 + $0x60] sm:$0xff]  ;;  %v601_v28 = vld [vmem:[%s879_s1 + $0x88] sm:$0xff]  ;;  %v183_v31 = vld [vmem:[%s707_s20 + $0x70] sm:$0xff] }
  0x15   : > { %v600_v29 = vld [vmem:[%s879_s1 + $0x80] sm:$0xff]  ;;  %v182_v30 = vld [vmem:[%s707_s20 + $0x68] sm:$0xff]  ;;  %v184_v32 = vld [vmem:[%s707_s20 + $0x78] sm:$0xff] }
  0x16   : > { %360 = vmatpush.msra.mxu1 %v610_v16  ;;  %v791_v33 = vld [vmem:[%s880_s2] sm:$0xf]  ;;  %v631_v62 = vld [vmem:[%s879_s1 + $0x178] sm:$0xff]  ;;  %v630_v1 = vld [vmem:[%s879_s1 + $0x170] sm:$0xff] }
  0x17   : > { %634 = vmatmul.msk.f32.gmra.mxu0 %vm224_vm0, %v170_v2  ;;  %v795_v34 = vperm.slane %v791_v33, 0  ;;  %437 = vmatpush.msra.mxu2 %v631_v62  ;;  %v625_v10 = vld [vmem:[%s879_s1 + $0x148] sm:$0xff]  ;;  %v624_v11 = vld [vmem:[%s879_s1 + $0x140] sm:$0xff]  ;;  %v623_v12 = vld [vmem:[%s879_s1 + $0x138] sm:$0xff] }
  0x18   : > { %361 = vmatpush.msra.mxu1 %v609_v17  ;;  %v622_v15 = vld [vmem:[%s879_s1 + $0x130] sm:$0xff]  ;;  %v621_v17 = vld [vmem:[%s879_s1 + $0x128] sm:$0xff] }
  0x19   : > { %438 = vmatpush.msra.mxu2 %v630_v1 }
  0x1a   : > { %362 = vmatpush.msra.mxu1 %v608_v19  ;;  %v619_v19 = vld [vmem:[%s879_s1 + $0x118] sm:$0xff] }
  0x1c   : > { %363 = vmatpush.msra.mxu1 %v607_v20 }
  0x1e   : > { %364 = vmatpush.msra.mxu1 %v606_v21 }
  0x1f   : > { %635 = vmatmul.msk.f32.gmra.mxu0 %vm224_vm0, %v171_v3  ;;  %v629_v3 = vld [vmem:[%s879_s1 + $0x168] sm:$0xff] }
  0x20   : > { %365 = vmatpush.msra.mxu1 %v605_v22  ;;  %439 = vmatpush.msra.mxu2 %v629_v3  ;;  %v618_v22 = vld [vmem:[%s879_s1 + $0x110] sm:$0xff] }
  0x22   : > { %366 = vmatpush.msra.mxu1 %v604_v24  ;;  %v617_v24 = vld [vmem:[%s879_s1 + $0x108] sm:$0xff] }
  0x24   : > { %367 = vmatpush.msra.mxu1 %v603_v25  ;;  %v616_v25 = vld [vmem:[%s879_s1 + $0x100] sm:$0xff] }
  0x26   : > { %368 = vmatpush.msra.mxu1 %v602_v26 }
  0x27   : > { %636 = vmatmul.msk.f32.gmra.mxu0 %vm224_vm0, %v172_v4  ;;  %v628_v4 = vld [vmem:[%s879_s1 + $0x160] sm:$0xff] }
  0x28   : > { %369 = vmatpush.msra.mxu1 %v601_v28  ;;  %440 = vmatpush.msra.mxu2 %v628_v4 }
  0x2a   : > { %370 = vmatpush.msra.mxu1 %v600_v29 }
  0x2f   : > { %637 = vmatmul.msk.f32.gmra.mxu0 %vm224_vm0, %v173_v5  ;;  %v627_v5 = vld [vmem:[%s879_s1 + $0x158] sm:$0xff] }
  0x30   : > { %441 = vmatpush.msra.mxu2 %v627_v5 }
  0x37   : > { %638 = vmatmul.msk.f32.gmra.mxu0 %vm224_vm0, %v174_v6 }
  0x3f   : > { %639 = vmatmul.msk.f32.gmra.mxu0 %vm224_vm0, %v175_v7 }
  0x47   : > { %640 = vmatmul.msk.f32.gmra.mxu0 %vm224_vm0, %v176_v8  ;;  %v626_v8 = vld [vmem:[%s879_s1 + $0x150] sm:$0xff] }
  0x48   : > { %442 = vmatpush.msra.mxu2 %v626_v8 }
  0x4a   : > { %443 = vmatpush.msra.mxu2 %v625_v10 }
  0x4c   : > { %444 = vmatpush.msra.mxu2 %v624_v11 }
  0x4e   : > { %445 = vmatpush.msra.mxu2 %v623_v12 }
  0x4f   : > { %641 = vmatmul.msk.f32.gmra.mxu0 %vm224_vm0, %v177_v9 }
  0x50   : > { %446 = vmatpush.msra.mxu2 %v622_v15 }
  0x52   : > { %447 = vmatpush.msra.mxu2 %v621_v17 }
  0x57   : > { %642 = vmatmul.msk.f32.gmra.mxu0 %vm224_vm0, %v178_v13 }
  0x5f   : > { %643 = vmatmul.msk.f32.gmra.mxu0 %vm224_vm0, %v179_v18  ;;  %v620_v18 = vld [vmem:[%s879_s1 + $0x120] sm:$0xff] }
  0x60   : > { %448 = vmatpush.msra.mxu2 %v620_v18 }
  0x62   : > { %449 = vmatpush.msra.mxu2 %v619_v19 }
  0x64   : > { %450 = vmatpush.msra.mxu2 %v618_v22 }
  0x66   : > { %451 = vmatpush.msra.mxu2 %v617_v24 }
  0x67   : > { %644 = vmatmul.msk.f32.gmra.mxu0 %vm224_vm0, %v180_v23 }
  0x68   : > { %452 = vmatpush.msra.mxu2 %v616_v25 }
  0x6f   : > { %645 = vmatmul.msk.f32.gmra.mxu0 %vm224_vm0, %v181_v27 }
  0x77   : > { %646 = vmatmul.msk.f32.gmra.mxu0 %vm224_vm0, %v182_v30 }
  0x7f   : > { %647 = vmatmul.msk.f32.gmra.mxu0 %vm224_vm0, %v183_v31 }
  0x87   : > { %648 = vmatmul.msk.f32.gmra.mxu0 %vm224_vm0, %v184_v32 }
  0x8c   : > { %v290_v35 = vpop.f32.mrf.mxu0 }
  0x8d   : > { %v291_v36 = vadd.f32 %v290_v35, %v795_v34 }
  0x8f   : > { %v338_v37 = vmax.f32 %v291_v36, 0.0 }
  0x91   : > { %371 = vmatmul.f32.vlgmr.msra.gmra.mxu1 %v338_v37  ;;  %v354_v37 = vperm.slane %v791_v33, 1 }
  0x94   : > { %v293_v38 = vpop.f32.mrf.mxu0 }
  0x95   : > { %v294_v39 = vadd.f32 %v293_v38, %v795_v34 }
  0x97   : > { %v339_v40 = vmax.f32 %v294_v39, 0.0 }
  0x99   : > { %374 = vmatmul.f32.gmra.mxu1 %v339_v40 }
  0x9c   : > { %v296_v41 = vpop.f32.mrf.mxu0 }
  0x9d   : > { %v297_v42 = vadd.f32 %v296_v41, %v795_v34 }
  0x9f   : > { %v340_v43 = vmax.f32 %v297_v42, 0.0 }
  0xa1   : > { %377 = vmatmul.f32.gmra.mxu1 %v340_v43 }
  0xa4   : > { %v299_v44 = vpop.f32.mrf.mxu0 }
  0xa5   : > { %v300_v45 = vadd.f32 %v299_v44, %v795_v34 }
  0xa7   : > { %v341_v46 = vmax.f32 %v300_v45, 0.0 }
  0xa9   : > { %380 = vmatmul.f32.gmra.mxu1 %v341_v46 }
  0xac   : > { %v302_v47 = vpop.f32.mrf.mxu0 }
  0xad   : > { %v303_v48 = vadd.f32 %v302_v47, %v795_v34 }
  0xaf   : > { %v342_v49 = vmax.f32 %v303_v48, 0.0 }
  0xb1   : > { %383 = vmatmul.f32.gmra.mxu1 %v342_v49 }
  0xb4   : > { %v305_v50 = vpop.f32.mrf.mxu0 }
  0xb5   : > { %v306_v51 = vadd.f32 %v305_v50, %v795_v34 }
  0xb7   : > { %v343_v52 = vmax.f32 %v306_v51, 0.0 }
  0xb9   : > { %386 = vmatmul.f32.gmra.mxu1 %v343_v52 }
  0xbc   : > { %v308_v53 = vpop.f32.mrf.mxu0 }
  0xbd   : > { %v309_v54 = vadd.f32 %v308_v53, %v795_v34 }
  0xbf   : > { %v344_v55 = vmax.f32 %v309_v54, 0.0 }
  0xc1   : > { %389 = vmatmul.f32.gmra.mxu1 %v344_v55 }
  0xc4   : > { %v311_v56 = vpop.f32.mrf.mxu0 }
  0xc5   : > { %v312_v57 = vadd.f32 %v311_v56, %v795_v34 }
  0xc7   : > { %v345_v58 = vmax.f32 %v312_v57, 0.0 }
  0xc9   : > { %392 = vmatmul.f32.gmra.mxu1 %v345_v58 }
  0xcc   : > { %v314_v59 = vpop.f32.mrf.mxu0 }
  0xcd   : > { %v315_v60 = vadd.f32 %v314_v59, %v795_v34 }
  0xcf   : > { %v346_v61 = vmax.f32 %v315_v60, 0.0 }
  0xd1   : > { %395 = vmatmul.f32.gmra.mxu1 %v346_v61 }
  0xd4   : > { %v317_v63 = vpop.f32.mrf.mxu0 }
  0xd5   : > { %v318_v0 = vadd.f32 %v317_v63, %v795_v34 }
  0xd7   : > { %v347_v2 = vmax.f32 %v318_v0, 0.0 }
  0xd9   : > { %398 = vmatmul.f32.gmra.mxu1 %v347_v2 }
  0xdc   : > { %v320_v6 = vpop.f32.mrf.mxu0 }
  0xdd   : > { %v321_v7 = vadd.f32 %v320_v6, %v795_v34 }
  0xdf   : > { %v348_v9 = vmax.f32 %v321_v7, 0.0 }
  0xe1   : > { %401 = vmatmul.f32.gmra.mxu1 %v348_v9 }
  0xe4   : > { %v323_v13 = vpop.f32.mrf.mxu0 }
  0xe5   : > { %v324_v14 = vadd.f32 %v323_v13, %v795_v34 }
  0xe7   : > { %v349_v16 = vmax.f32 %v324_v14, 0.0 }
  0xe9   : > { %404 = vmatmul.f32.gmra.mxu1 %v349_v16 }
  0xec   : > { %v326_v20 = vpop.f32.mrf.mxu0 }
  0xed   : > { %v327_v21 = vadd.f32 %v326_v20, %v795_v34 }
  0xef   : > { %v350_v23 = vmax.f32 %v327_v21, 0.0 }
  0xf1   : > { %407 = vmatmul.f32.gmra.mxu1 %v350_v23 }
  0xf4   : > { %v329_v26 = vpop.f32.mrf.mxu0 }
  0xf5   : > { %v330_v27 = vadd.f32 %v329_v26, %v795_v34 }
  0xf7   : > { %v351_v28 = vmax.f32 %v330_v27, 0.0 }
  0xf9   : > { %410 = vmatmul.f32.gmra.mxu1 %v351_v28 }
  0xfc   : > { %v332_v29 = vpop.f32.mrf.mxu0 }
  0xfd   : > { %v333_v30 = vadd.f32 %v332_v29, %v795_v34 }
  0xff   : > { %v352_v31 = vmax.f32 %v333_v30, 0.0 }
 0x101   : > { %413 = vmatmul.f32.gmra.mxu1 %v352_v31 }
 0x104   : > { %v335_v32 = vpop.f32.mrf.mxu0 }
 0x105   : > { %v336_v35 = vadd.f32 %v335_v32, %v795_v34 }
 0x107   : > { %v353_v36 = vmax.f32 %v336_v35, 0.0 }
 0x109   : > { %416 = vmatmul.f32.gmra.mxu1 %v353_v36 }
 0x10e   : > { %v372_v38 = vpop.f32.mrf.mxu1 }
 0x10f   : > { %v373_v39 = vadd.f32 %v372_v38, %v354_v37 }
 0x111   : > { %v420_v40 = vmax.f32 %v373_v39, 0.0 }
 0x113   : > { %453 = vmatmul.f32.vlgmr.msra.gmra.mxu2 %v420_v40 }
 0x116   : > { %v375_v41 = vpop.f32.mrf.mxu1 }
 0x117   : > { %v376_v42 = vadd.f32 %v375_v41, %v354_v37 }
 0x119   : > { %v421_v43 = vmax.f32 %v376_v42, 0.0 }
 0x11b   : > { %456 = vmatmul.f32.gmra.mxu2 %v421_v43 }
 0x11e   : > { %v378_v44 = vpop.f32.mrf.mxu1 }
 0x11f   : > { %v379_v45 = vadd.f32 %v378_v44, %v354_v37 }
 0x121   : > { %v422_v46 = vmax.f32 %v379_v45, 0.0 }
 0x123   : > { %459 = vmatmul.f32.gmra.mxu2 %v422_v46 }
 0x126   : > { %v381_v47 = vpop.f32.mrf.mxu1 }
 0x127   : > { %v382_v48 = vadd.f32 %v381_v47, %v354_v37 }
 0x129   : > { %v423_v49 = vmax.f32 %v382_v48, 0.0 }
 0x12b   : > { %462 = vmatmul.f32.gmra.mxu2 %v423_v49 }
 0x12e   : > { %v384_v34 = vpop.f32.mrf.mxu1 }
 0x12f   : > { %v385_v50 = vadd.f32 %v384_v34, %v354_v37 }
 0x131   : > { %v424_v51 = vmax.f32 %v385_v50, 0.0 }
 0x133   : > { %465 = vmatmul.f32.gmra.mxu2 %v424_v51 }
 0x136   : > { %v387_v52 = vpop.f32.mrf.mxu1 }
 0x137   : > { %v388_v53 = vadd.f32 %v387_v52, %v354_v37 }
 0x139   : > { %v425_v54 = vmax.f32 %v388_v53, 0.0 }
 0x13b   : > { %468 = vmatmul.f32.gmra.mxu2 %v425_v54 }
 0x13e   : > { %v390_v55 = vpop.f32.mrf.mxu1 }
 0x13f   : > { %v391_v56 = vadd.f32 %v390_v55, %v354_v37 }
 0x141   : > { %v426_v57 = vmax.f32 %v391_v56, 0.0 }
 0x143   : > { %471 = vmatmul.f32.gmra.mxu2 %v426_v57 }
 0x146   : > { %v393_v58 = vpop.f32.mrf.mxu1 }
 0x147   : > { %v394_v59 = vadd.f32 %v393_v58, %v354_v37  ;;  %v669_v58 = vmov 0  }
 0x148   : > { %660 = vset.pattern.permute.xlu0 %v669_v58 }
 0x149   : > { %v427_v60 = vmax.f32 %v394_v59, 0.0  ;;  %540 = vperm.xlu0 %660, %v791_v33  }
 0x14b   : > { %474 = vmatmul.f32.gmra.mxu2 %v427_v60 }
 0x14e   : > { %v396_v61 = vpop.f32.mrf.mxu1 }
 0x14f   : > { %v397_v62 = vadd.f32 %v396_v61, %v354_v37 }
 0x151   : > { %v428_v63 = vmax.f32 %v397_v62, 0.0 }
 0x153   : > { %477 = vmatmul.f32.gmra.mxu2 %v428_v63 }
 0x156   : > { %v399_v0 = vpop.f32.mrf.mxu1 }
 0x157   : > { %v400_v1 = vadd.f32 %v399_v0, %v354_v37 }
 0x159   : > { %v429_v2 = vmax.f32 %v400_v1, 0.0 }
 0x15b   : > { %480 = vmatmul.f32.gmra.mxu2 %v429_v2 }
 0x15e   : > { %v402_v3 = vpop.f32.mrf.mxu1 }
 0x15f   : > { %v403_v4 = vadd.f32 %v402_v3, %v354_v37 }
 0x161   : > { %v430_v5 = vmax.f32 %v403_v4, 0.0 }
 0x163   : > { %483 = vmatmul.f32.gmra.mxu2 %v430_v5 }
 0x166   : > { %v405_v6 = vpop.f32.mrf.mxu1 }
 0x167   : > { %v406_v7 = vadd.f32 %v405_v6, %v354_v37 }
 0x169   : > { %v431_v8 = vmax.f32 %v406_v7, 0.0  ;;  %v632_v7 = vld [vmem:[%s879_s1 + $0x180] sm:$0xff] }
 0x16b   : > { %486 = vmatmul.f32.gmra.mxu2 %v431_v8 }
 0x16e   : > { %v408_v9 = vpop.f32.mrf.mxu1 }
 0x16f   : > { %v409_v10 = vadd.f32 %v408_v9, %v354_v37 }
 0x171   : > { %v432_v11 = vmax.f32 %v409_v10, 0.0 }
 0x173   : > { %489 = vmatmul.f32.gmra.mxu2 %v432_v11 }
 0x176   : > { %v411_v12 = vpop.f32.mrf.mxu1 }
 0x177   : > { %v412_v13 = vadd.f32 %v411_v12, %v354_v37 }
 0x179   : > { %v433_v14 = vmax.f32 %v412_v13, 0.0 }
 0x17b   : > { %492 = vmatmul.f32.gmra.mxu2 %v433_v14 }
 0x17e   : > { %v414_v15 = vpop.f32.mrf.mxu1 }
 0x17f   : > { %v415_v16 = vadd.f32 %v414_v15, %v354_v37 }
 0x181   : > { %v434_v17 = vmax.f32 %v415_v16, 0.0 }
 0x183   : > { %495 = vmatmul.f32.gmra.mxu2 %v434_v17 }
 0x186   : > { %v417_v18 = vpop.f32.mrf.mxu1 }
 0x187   : > { %v418_v19 = vadd.f32 %v417_v18, %v354_v37  ;;  %v436_v37 = vperm.slane %v791_v33, 2 }
 0x189   : > { %v435_v20 = vmax.f32 %v418_v19, 0.0 }
 0x18b   : > { %498 = vmatmul.f32.gmra.mxu2 %v435_v20 }
 0x196   : > { %v862_v21 = vpop.f32.mrf.mxu2 }
 0x197   : > { %v455_v5 = vadd.f32 %v862_v21, %v436_v37 }
 0x199   : > { %v502_v6 = vmax.f32 %v455_v5, 0.0 }
 0x19e   : > { %v457_v22 = vpop.f32.mrf.mxu2 }
 0x19f   : > { %v458_v3 = vadd.f32 %v457_v22, %v436_v37 }
 0x1a1   : > { %v503_v33 = vmax.f32 %v458_v3, 0.0 }
 0x1a6   : > { %v460_v23 = vpop.f32.mrf.mxu2 }
 0x1a7   : > { %v461_v1 = vadd.f32 %v460_v23, %v436_v37 }
 0x1a9   : > { %v504_v4 = vmax.f32 %v461_v1, 0.0 }
 0x1ae   : > { %v463_v24 = vpop.f32.mrf.mxu2 }
 0x1af   : > { %v464_v63 = vadd.f32 %v463_v24, %v436_v37 }
 0x1b1   : > { %v505_v2 = vmax.f32 %v464_v63, 0.0 }
 0x1b6   : > { %v466_v25 = vpop.f32.mrf.mxu2 }
 0x1b7   : > { %v467_v61 = vadd.f32 %v466_v25, %v436_v37 }
 0x1b9   : > { %v506_v0 = vmax.f32 %v467_v61, 0.0 }
 0x1bb   : > { %v541_v8 = vpop.permute.xlu0 %540 }
 0x1bc   : > { %v542_v9 = vrot.slane %v541_v8, 3 }
 0x1be   : > { %v469_v26 = vpop.f32.mrf.mxu2 }
 0x1bf   : > { %v470_v59 = vadd.f32 %v469_v26, %v436_v37 }
 0x1c1   : > { %v507_v62 = vmax.f32 %v470_v59, 0.0 }
 0x1c6   : > { %v472_v27 = vpop.f32.mrf.mxu2 }
 0x1c7   : > { %v473_v56 = vadd.f32 %v472_v27, %v436_v37 }
 0x1c9   : > { %v508_v60 = vmax.f32 %v473_v56, 0.0 }
 0x1ce   : > { %v475_v28 = vpop.f32.mrf.mxu2 }
 0x1cf   : > { %v476_v54 = vadd.f32 %v475_v28, %v436_v37 }
 0x1d1   : > { %v509_v57 = vmax.f32 %v476_v54, 0.0 }
 0x1d6   : > { %v478_v29 = vpop.f32.mrf.mxu2 }
 0x1d7   : > { %v479_v52 = vadd.f32 %v478_v29, %v436_v37 }
 0x1d9   : > { %v510_v55 = vmax.f32 %v479_v52, 0.0 }
 0x1de   : > { %v481_v30 = vpop.f32.mrf.mxu2 }
 0x1df   : > { %v482_v50 = vadd.f32 %v481_v30, %v436_v37 }
 0x1e1   : > { %v511_v53 = vmax.f32 %v482_v50, 0.0 }
 0x1e6   : > { %v484_v31 = vpop.f32.mrf.mxu2 }
 0x1e7   : > { %v485_v49 = vadd.f32 %v484_v31, %v436_v37 }
 0x1e9   : > { %v512_v51 = vmax.f32 %v485_v49, 0.0 }
 0x1ee   : > { %v487_v32 = vpop.f32.mrf.mxu2 }
 0x1ef   : > { %v488_v47 = vadd.f32 %v487_v32, %v436_v37 }
 0x1f1   : > { %v513_v34 = vmax.f32 %v488_v47, 0.0 }
 0x1f6   : > { %v490_v35 = vpop.f32.mrf.mxu2 }
 0x1f7   : > { %v491_v45 = vadd.f32 %v490_v35, %v436_v37 }
 0x1f9   : > { %v514_v48 = vmax.f32 %v491_v45, 0.0 }
 0x1fe   : > { %v493_v36 = vpop.f32.mrf.mxu2 }
 0x1ff   : > { %v494_v43 = vadd.f32 %v493_v36, %v436_v37 }
 0x201   : > { %v515_v46 = vmax.f32 %v494_v43, 0.0 }
 0x206   : > { %v496_v38 = vpop.f32.mrf.mxu2 }
 0x207   : > { %v497_v41 = vadd.f32 %v496_v38, %v436_v37 }
 0x209   : > { %v516_v44 = vmax.f32 %v497_v41, 0.0 }
 0x20e   : > { %v499_v39 = vpop.f32.mrf.mxu2 }
 0x20f   : > { %v500_v40 = vadd.f32 %v499_v39, %v436_v37 }
 0x211   : > { %v517_v42 = vmax.f32 %v500_v40, 0.0 }
 0x213   : > { %518 = vmatpush.xpose.msra.mxu3 %v517_v42 }
 0x217   : > { %519 = vmatpush.xpose.msra.mxu3 %v516_v44 }
 0x21b   : > { %520 = vmatpush.xpose.msra.mxu3 %v515_v46 }
 0x21f   : > { %521 = vmatpush.xpose.msra.mxu3 %v514_v48 }
 0x223   : > { %522 = vmatpush.xpose.msra.mxu3 %v513_v34 }
 0x227   : > { %523 = vmatpush.xpose.msra.mxu3 %v512_v51 }
 0x22b   : > { %524 = vmatpush.xpose.msra.mxu3 %v511_v53 }
 0x22f   : > { %525 = vmatpush.xpose.msra.mxu3 %v510_v55 }
 0x233   : > { %526 = vmatpush.xpose.msra.mxu3 %v509_v57 }
 0x237   : > { %527 = vmatpush.xpose.msra.mxu3 %v508_v60 }
 0x23b   : > { %528 = vmatpush.xpose.msra.mxu3 %v507_v62 }
 0x23f   : > { %529 = vmatpush.xpose.msra.mxu3 %v506_v0 }
 0x243   : > { %530 = vmatpush.xpose.msra.mxu3 %v505_v2 }
 0x247   : > { %531 = vmatpush.xpose.msra.mxu3 %v504_v4 }
 0x24b   : > { %532 = vmatpush.xpose.msra.mxu3 %v503_v33 }
 0x24f   : > { %533 = vmatpush.xpose.msra.mxu3 %v502_v6 }
 0x252   : > { %534 = vmatmul.f32.vlgmr.msra.gmra.mxu3 %v632_v7 }
 0x2d5   : > { %v535_v10 = vpop.f32.mrf.mxu3 }
 0x2d6   : > { %v544_v11 = vadd.f32 %v542_v9, %v535_v10 }
 0x2d8   : > { %545 = vst [vmem:[%s168_s16] sm:$0x1] %v544_v11 }
 0x2d9 PF: > { %s13_s12 = sadd.s32 1, %s667_s12  }
 0x2da   : > { %p10_p5 = scmp.ge.s32.totalorder %s13_s12, 4  }
 0x2dc   :  { %12 = sbr.rel (!%p10_p5) target bundleno = 1 (0x1), region = 65 }

</bundles_post_ra>
